<compile_context>
chip_gen: v6e
topology: v6e:2x2x1
jax: 0.10.0
libtpu: 0.0.40
codegen_flags: <defaults>
</compile_context>

<pallas_src>
import jax
import jax.numpy as jnp
from jax.experimental import pallas as pl
from jax.experimental.pallas import tpu as pltpu


# ------------------------------ small helpers -------------------------------

def _round_up(x, m):
    return ((x + m - 1) // m) * m


def _mxu_lane_pad():
    """Class-dim padding: v6e/v7x MXUs are 256 wide, v5e (and older) 128."""
    try:
        kind = jax.devices()[0].device_kind.lower()
    except Exception:
        return 128
    return 256 if ("v6" in kind or "v7" in kind) else 128


# Budget (bytes) for the whole resident-W block footprint.  Kept well under
# v7x's 64 MiB physical VMEM (and the default 32 MiB scoped limit).
_RESIDENT_BUDGET = 28 * 1024 * 1024
_TK = 512            # fixed K tile for the streamed (large-F) path


def _resident_footprint(f, c_pad, tm, x_itemsize=4):
    """VMEM bytes for the resident-W path (double-buffered blocks)."""
    return (2 * tm * f * x_itemsize          # x blocks (input dtype, cast in-kernel)
            + 2 * f * c_pad * 2              # resident bf16 weight
            + 2 * tm * c_pad * 4             # f32 output blocks
            + 2 * c_pad * 4)                 # bias


def _vmem_limit(footprint):
    """Block footprint + compiler headroom, valid on every TPU generation."""
    return int(min(max(footprint * 5 // 4 + (2 << 20), 8 << 20), 48 << 20))


# ----------------------------- Pallas kernels --------------------------------

def _resident_kernel(x_ref, w_ref, b_ref, o_ref):
    # x_ref: (tm, F) input-dtype   w_ref: (F, C_pad) bf16 (whole weight)
    # b_ref: (1, C_pad) f32        o_ref: (tm, C_pad) f32
    x = x_ref[...].astype(jnp.bfloat16)          # on-chip cast (VPU, hidden under DMA)
    o_ref[...] = (jnp.dot(x, w_ref[...], preferred_element_type=jnp.float32)
                  + b_ref[...])                  # bias fused into the only store


def _tiled_kernel(x_ref, w_ref, b_ref, o_ref, acc_ref):
    # x_ref: (tm, tk) input-dtype   w_ref: (tk, tc) bf16   b_ref: (1, tc) f32
    # o_ref: (tm, tc) f32           acc_ref: (tm, tc) f32 scratch
    k = pl.program_id(2)
    part = jnp.dot(x_ref[...].astype(jnp.bfloat16), w_ref[...],
                   preferred_element_type=jnp.float32)

    @pl.when(k == 0)
    def _():                       # first K step overwrites: no zero-fill pass
        acc_ref[...] = part

    @pl.when(k != 0)
    def _():
        acc_ref[...] += part

    @pl.when(k == pl.num_programs(2) - 1)
    def _():                       # bias fused at the epilogue
        o_ref[...] = acc_ref[...] + b_ref[...]


# ------------------------------ host wrapper ---------------------------------

def pallas_linear(x, w_pad, b_pad, num_valid_cols, *, tile_m=512):
    """y = x @ w_pad + b_pad, sliced to the first num_valid_cols columns.

    x:      (N, F)           f32 (or bf16) activations; cast to bf16 in-kernel
    w_pad:  (F_pad, C_pad)   bf16; C_pad lane-aligned, padded rows/cols are 0
    b_pad:  (1, C_pad)       f32
    return: (N, num_valid_cols) f32
    """
    n, f = x.shape
    f_pad, c_pad = w_pad.shape
    itemsize = jnp.dtype(x.dtype).itemsize

    # M tile: multiple of 16 sublanes (bf16-friendly), capped at tile_m.  When
    # the parallel grid would collapse to one tile but the batch is big enough,
    # split M in two so both v7x TensorCores get work.
    tm = min(tile_m, _round_up(n, 16))
    if n > 16 and pl.cdiv(n, tm) < 2:
        tm = max(16, _round_up(pl.cdiv(n, 2), 16))

    resident = (f == f_pad
                and _resident_footprint(f, c_pad, tm, itemsize) <= _RESIDENT_BUDGET)

    if resident:
        # ---- resident-W path: W/bias fetched once (constant index_map), grid
        # over M only, single fused dot+bias store per tile.
        footprint = _resident_footprint(f, c_pad, tm, itemsize)
        out = pl.pallas_call(
            _resident_kernel,
            out_shape=jax.ShapeDtypeStruct((n, c_pad), jnp.float32),
            grid_spec=pltpu.PrefetchScalarGridSpec(
                num_scalar_prefetch=0,
                grid=(pl.cdiv(n, tm),),
                in_specs=[
                    pl.BlockSpec((tm, f), lambda i: (i, 0)),
                    pl.BlockSpec((f, c_pad), lambda i: (0, 0)),
                    pl.BlockSpec((1, c_pad), lambda i: (0, 0)),
                ],
                out_specs=pl.BlockSpec((tm, c_pad), lambda i: (i, 0)),
            ),
            compiler_params=pltpu.CompilerParams(
                dimension_semantics=("parallel",),
                vmem_limit_bytes=_vmem_limit(footprint),
            ),
        )(x, w_pad, b_pad)
    else:
        # ---- streamed path for large heads: M/C/K tiled, f32 accumulator.
        if f != f_pad:
            # Weight rows beyond F were zero-padded at init, so zero-padding x
            # keeps the reduction exact.
            x = jnp.pad(x, ((0, 0), (0, f_pad - f)))
        if f_pad % _TK == 0:
            tk = _TK
        elif f_pad % 256 == 0:
            tk = 256
        elif f_pad % 128 == 0:
            tk = 128
        else:
            tk = f_pad
        tc = 512 if c_pad % 512 == 0 else (256 if c_pad % 256 == 0 else 128)
        tm = min(1024, _round_up(n, 16))
        if n > 16 and pl.cdiv(n, tm) < 2 and pl.cdiv(c_pad, tc) < 2:
            tm = max(16, _round_up(pl.cdiv(n, 2), 16))
        footprint = (2 * tm * tk * itemsize + 2 * tk * tc * 2
                     + 2 * tm * tc * 4 + tm * tc * 4 + 2 * tc * 4)
        out = pl.pallas_call(
            _tiled_kernel,
            out_shape=jax.ShapeDtypeStruct((n, c_pad), jnp.float32),
            grid_spec=pltpu.PrefetchScalarGridSpec(
                num_scalar_prefetch=0,
                grid=(pl.cdiv(n, tm), pl.cdiv(c_pad, tc), pl.cdiv(f_pad, tk)),
                in_specs=[
                    pl.BlockSpec((tm, tk), lambda i, j, k: (i, k)),
                    pl.BlockSpec((tk, tc), lambda i, j, k: (k, j)),
                    pl.BlockSpec((1, tc), lambda i, j, k: (0, j)),
                ],
                out_specs=pl.BlockSpec((tm, tc), lambda i, j, k: (i, j)),
                scratch_shapes=[pltpu.VMEM((tm, tc), jnp.float32)],
            ),
            compiler_params=pltpu.CompilerParams(
                dimension_semantics=("parallel", "parallel", "arbitrary"),
                vmem_limit_bytes=_vmem_limit(footprint),
            ),
        )(x, w_pad, b_pad)

    # Padded logit columns must never reach a softmax/CE; slice them off
    # (tiny N x C copy, skipped entirely when C is already lane-aligned).
    if num_valid_cols == c_pad:
        return out
    return out[:, :num_valid_cols]


# -------------------------------- Classifier ---------------------------------

class Classifier:
    """JAX/Pallas port of Featurizer/classifier.py::Classifier.

    `features` in the reference module is assigned externally and is None in
    __init__; here it defaults to identity (flatten only).
    """

    def __init__(self, num_classes, feature_planes, key):
        if isinstance(num_classes, int):
            num_classes = (num_classes,)
        self.num_classes = tuple(num_classes)
        self.feature_planes = feature_planes
        # TODO(synk): `self.features` is an externally-assigned backbone in the
        # reference code (None in its __init__); identity stand-in here.
        self.features = lambda x: x
        self._features_is_identity = True

        lane = _mxu_lane_pad()
        kscale = 1.0 / (feature_planes ** 0.5)
        self.fcs = []
        for c in self.num_classes:
            key, kw, kb = jax.random.split(key, 3)
            c_pad = _round_up(c, lane)
            # Decide at init whether this head's weight stays fully VMEM-resident
            # (typical classifier head) or needs the K-tiled streaming path; in
            # the latter case also pad F so a fixed K tile always divides it.
            resident = (_resident_footprint(feature_planes, c_pad, 512)
                        <= _RESIDENT_BUDGET)
            f_pad = feature_planes if resident else _round_up(feature_planes, _TK)

            # torch.nn.Linear-style init (uniform(-k, k), k = 1/sqrt(F)).
            w = jax.random.uniform(kw, (feature_planes, c), jnp.float32,
                                   -kscale, kscale)
            b = jax.random.uniform(kb, (c,), jnp.float32, -kscale, kscale)
            w_pad = jnp.zeros((f_pad, c_pad), jnp.bfloat16)
            w_pad = w_pad.at[:feature_planes, :c].set(w.astype(jnp.bfloat16))
            b_pad = jnp.zeros((1, c_pad), jnp.float32).at[0, :c].set(b)
            self.fcs.append((w_pad, b_pad, c))

    def __call__(self, x, classifier_index=0):
        if isinstance(x, list):
            assert len(x) <= len(self.fcs), (
                "list input pairs tensor i with classifier head i")
            if self._features_is_identity:
                # No concat/split round-trip: identical math, two fewer full
                # HBM copies of the activations.
                outs = [self.features(xi).reshape(-1, self.feature_planes)
                        for xi in x]
            else:
                sizes = [int(xi.shape[0]) for xi in x]
                cat = jnp.concatenate(x, axis=0)
                flat = self.features(cat).reshape(-1, self.feature_planes)
                outs, start = [], 0
                for s in sizes:
                    outs.append(flat[start:start + s])
                    start += s
            return [pallas_linear(o, *self.fcs[i]) for i, o in enumerate(outs)]
        else:
            assert classifier_index < len(self.fcs)
            out = self.features(x)
            out = out.reshape(-1, self.feature_planes)
            w_pad, b_pad, c = self.fcs[classifier_index]
            return pallas_linear(out, w_pad, b_pad, c)


# ----------------------------------- main ------------------------------------

if __name__ == "__main__":
    key = jax.random.PRNGKey(0)
    key, kx, kp = jax.random.split(key, 3)

    # Small NCHW input: (batch=2, channels=8, H=2, W=2) -> flattens to
    # (2, feature_planes=32) since `features` is identity.
    batch, chans, h, w = 2, 8, 2, 2
    feature_planes = chans * h * w          # 32
    num_classes = (10, 5)

    x = jax.random.normal(kx, (batch, chans, h, w), jnp.float32)
    clf = Classifier(num_classes, feature_planes, kp)

    # Single-tensor branch.
    y0 = clf(x, classifier_index=0)
    y0 = jax.block_until_ready(y0)
    assert y0.shape == (batch, num_classes[0])

    # Reference check vs plain JAX (same bf16 weights, f32 accumulation).
    flat = x.reshape(-1, feature_planes)
    w_pad, b_pad, c0 = clf.fcs[0]
    ref = (jnp.dot(flat.astype(jnp.bfloat16), w_pad[:feature_planes],
                   preferred_element_type=jnp.float32)[:, :c0]
           + b_pad[0, :c0])
    assert jnp.allclose(y0, ref, atol=2e-2, rtol=2e-2)

    # List branch (one tensor per classifier head).
    x2 = jax.random.normal(key, (3, chans, h, w), jnp.float32)
    ys = clf([x, x2])
    ys = jax.block_until_ready(ys)
    assert ys[0].shape == (batch, num_classes[0])
    assert ys[1].shape == (3, num_classes[1])

    print("KERNEL_OK")
</pallas_src>

<mosaic_0001>
module attributes {stable_mosaic.version = 11 : i64} {
  func.func @_resident_kernel(%arg0: i32, %arg1: memref<16x32xf32, #tpu.memory_space<vmem>>, %arg2: memref<32x128xbf16, #tpu.memory_space<vmem>>, %arg3: memref<1x128xf32, #tpu.memory_space<vmem>>, %arg4: memref<16x128xf32, #tpu.memory_space<vmem>>) attributes {dimension_semantics = [#tpu.dimension_semantics<parallel>], iteration_bounds = array<i64: 1>, scalar_prefetch = 0 : i64, scratch_operands = 0 : i64, tpu.core_type = #tpu.core_type<tc>, window_params = [{transform_indices = @transform_0, window_bounds = array<i64: 16, 32>}, {pipeline_mode = #tpu.pipeline_mode<synchronous>, transform_indices = @transform_1, window_bounds = array<i64: 32, 128>}, {pipeline_mode = #tpu.pipeline_mode<synchronous>, transform_indices = @transform_2, window_bounds = array<i64: 1, 128>}, {transform_indices = @transform_3, window_bounds = array<i64: 16, 128>}]} {
    %c0 = arith.constant 0 : index
    %c0_0 = arith.constant 0 : index
    %0 = vector.load %arg1[%c0, %c0_0] : memref<16x32xf32, #tpu.memory_space<vmem>>, vector<16x32xf32>
    %1 = arith.truncf %0 : vector<16x32xf32> to vector<16x32xbf16>
    %c0_1 = arith.constant 0 : index
    %c0_2 = arith.constant 0 : index
    %2 = vector.load %arg2[%c0_1, %c0_2] : memref<32x128xbf16, #tpu.memory_space<vmem>>, vector<32x128xbf16>
    %cst = arith.constant dense<0.000000e+00> : vector<16x128xf32>
    %3 = tpu.matmul %1, %2, %cst {dimension_numbers = #tpu.dot_dimension_numbers<[1], [0], [0], [1], [0, 0, 1, 1], [], []>} : vector<16x32xbf16>, vector<32x128xbf16>, vector<16x128xf32> -> vector<16x128xf32>
    %c0_3 = arith.constant 0 : index
    %c0_4 = arith.constant 0 : index
    %4 = vector.load %arg3[%c0_3, %c0_4] : memref<1x128xf32, #tpu.memory_space<vmem>>, vector<1x128xf32>
    %5 = vector.broadcast %4 : vector<1x128xf32> to vector<16x128xf32>
    %6 = arith.addf %3, %5 : vector<16x128xf32>
    %c0_5 = arith.constant 0 : index
    %c0_6 = arith.constant 0 : index
    %7 = vector.load %arg4[%c0_5, %c0_6] : memref<16x128xf32, #tpu.memory_space<vmem>>, vector<16x128xf32>
    tpu.vector_store %arg4[%c0_5, %c0_6], %6 {strides = array<i32>} : memref<16x128xf32, #tpu.memory_space<vmem>>, vector<16x128xf32>,
    return
  }
  func.func @transform_0(%arg0: i32) -> (i32, i32) {
    %c0_i32 = arith.constant 0 : i32
    %c0_i32_0 = arith.constant 0 : i32
    return %arg0, %c0_i32 : i32, i32
  }
  func.func @transform_1(%arg0: i32) -> (i32, i32) {
    %c0_i32 = arith.constant 0 : i32
    %c0_i32_0 = arith.constant 0 : i32
    %c0_i32_1 = arith.constant 0 : i32
    return %c0_i32, %c0_i32_0 : i32, i32
  }
  func.func @transform_2(%arg0: i32) -> (i32, i32) {
    %c0_i32 = arith.constant 0 : i32
    %c0_i32_0 = arith.constant 0 : i32
    %c0_i32_1 = arith.constant 0 : i32
    return %c0_i32, %c0_i32_0 : i32, i32
  }
  func.func @transform_3(%arg0: i32) -> (i32, i32) {
    %c0_i32 = arith.constant 0 : i32
    %c0_i32_0 = arith.constant 0 : i32
    return %arg0, %c0_i32 : i32, i32
  }
}

</mosaic_0001>

<bundles_post_ra>
// kernel: tpu_custom_call.1
= control target key start
LH: loop header
LB: loop body
LE: loop exit
PB: predicated region body
PF: predicated region fallthrough
CT: control target
= control target key end

     0   :  { %8 = vsyncpa [#allocation3], 0  ;;  %s274_s0 = inlined_call_operand.hbm [shape: f32[2,32], index: 0, kind: input, shape index: {}]   ;;  %s275_s1 = inlined_call_operand.hbm [shape: bf16[32,128], index: 1, kind: input, shape index: {}]   ;;  %s276_s2 = inlined_call_operand.vmem [shape: f32[1,128], index: 2, kind: input, shape index: {}]   ;;  %s277_s3 = inlined_call_operand.hbm [shape: f32[2,128], index: 3, kind: output, shape index: {}]  }
   0x1   :  { %9 = vsyncpa [#allocation6], 0 }
   0x2   :  { %10 = vsyncpa [#allocation4], 0 }
   0x3   :  { %15 = vsyncadd [#allocation3], 224  ;;  %s227_s12 = smov [#allocation2]  }
   0x4   :  { %s16_s13 = sshll.u32 %s227_s12, 4  ;;  %s17_s13 = int_to_ptr.vmem [resolvable:$true] %s16_s13 }
   0x5   :  { %s169_s14 = scalar_lea.vmem %s17_s13, 32  ;;  %s173_s15 = scalar_lea.vmem %s17_s13, 256 }
   0x6   :  { %p170_p0 = scmp.ne.s32.totalorder %s17_s13, %s169_s14  ;;  %p174_p1 = scmp.lt.s32.totalorder %s17_s13, %s17_s13 }
   0x7   :  { %p175_p2 = scmp.lt.s32.totalorder %s173_s15, %s169_s14 }
   0x9   :  { %p176_p3 = por %p175_p2, %p174_p1 }
   0xb   :  { %p177_p4 = pnand %p176_p3, %p170_p0 }
   0xd   :  { %180 = shalt.err (!%p177_p4)
}
   0xe   :  { %s228_s16 = smov 32   ;;  %s229_s17 = smov 2  }
   0xf   :  { %22 = dma.hbm_to_vmem [thread:$0]  %s274_s0, 32, %s17_s13, [#allocation3], %s228_s16, %s228_s16, %s229_s17  }
  0x10   :  { %s230_s20 = smov [#allocation5]  }
  0x11   :  { %s28_s21 = sshll.u32 %s230_s20, 4  ;;  %s29_s21 = int_to_ptr.vmem [resolvable:$true] %s28_s21 }
  0x12   :  { %s189_s22 = scalar_lea.vmem %s29_s21, 256  ;;  %p194_p6 = scmp.lt.s32.totalorder %s29_s21, %s29_s21 }
  0x13   :  { %p190_p5 = scmp.ne.s32.totalorder %s29_s21, %s189_s22  ;;  %p195_p7 = scmp.lt.s32.totalorder %s189_s22, %s189_s22 }
  0x15   :  { %p196_p8 = por %p195_p7, %p194_p6 }
  0x17   :  { %p197_p9 = pnand %p196_p8, %p190_p5 }
  0x19   :  { %200 = shalt.err (!%p197_p9)
}
  0x1a   :  { %s231_s23 = smov 64   ;;  %s232_s24 = smov 4  }
  0x1b   :  { %34 = dma.hbm_to_vmem [thread:$0]  %s275_s1, 256, %s29_s21, [#allocation6], %s231_s23, %s231_s23, %s232_s24  }
  0x1c   :  { %221 = dma.done.wait [#allocation3], 256  }
  0x1d   :  { %222 = vsyncadd [#allocation3], 4294967040 }
  0x1e   :  { %223 = dma.done.wait [#allocation6], 256  }
  0x1f   :  { %224 = vsyncadd [#allocation6], 4294967040  ;;  %v233_v0 = vmov 0.0   ;;  %vm234_vm0 = vmmov 0   ;;  %v159_v1 = vld [vmem:[#allocation5 + $0x8] sm:$0xff]   ;;  %v160_v2 = vld [vmem:[#allocation5] sm:$0xff]  }
  0x20   :  { %142 = vmatprep.subr.bf16.mxu0 %v233_v0  ;;  %146 = vmatprep.mubr.msk.bf16.mxu0 %vm234_vm0, %v233_v0  ;;  %v44_v3 = vld [vmem:[#allocation2] sm:$0xff]  ;;  %v45_v4 = vld [vmem:[#allocation2 + $0x8] sm:$0xff]  ;;  %vm70_vm1 = vcmask 261120  }
  0x21   :  { %143 = vmatpush3.bf16.msra.mxu0 %v159_v1  ;;  %v46_v5 = vpack.c.bf16 %v45_v4, %v44_v3  ;;  %v135_v6 = vld [vmem:[%s276_s2] ss:$0 sm:$0xff] }
  0x22   :  { %144 = vmatprep.subr.bf16.mxu0 %v233_v0 }
  0x25   :  { %145 = vmatpush3.bf16.msra.mxu0 %v160_v2 }
  0x28   :  { %147 = vmatmul.mubr.msk.bf16.vlgmr.msra.gmra.mxu0 %vm70_vm1, %v46_v5 }
  0xe8   :  { %v108_v7 = vpop.f32.mrf.mxu0 }
  0xe9   :  { %v109_v8 = vadd.f32 %v135_v6, %v108_v7 }
  0xea   :  { %v148_v9 = vpop.f32.mrf.mxu0 }
  0xeb   :  { %115 = vst [vmem:[#allocation7] sm:$0xff] %v109_v8 }
  0xec   :  { %v111_v10 = vpop.f32.mrf.mxu0 }
  0xed   :  { %v112_v11 = vadd.f32 %v135_v6, %v111_v10 }
  0xee   :  { %v149_v12 = vpop.f32.mrf.mxu0 }
  0xef   :  { %116 = vst [vmem:[#allocation7 + $0x8] sm:$0xff] %v112_v11 }
  0xf0   :  { %121 = vsyncadd [#allocation4], 224  ;;  %s235_s27 = smov [#allocation7]  }
  0xf1   :  { %s122_s28 = sshll.u32 %s235_s27, 4  ;;  %s123_s28 = int_to_ptr.vmem [resolvable:$true] %s122_s28 }
  0xf2   :  { %s201_s29 = scalar_lea.vmem %s123_s28, 32  ;;  %s205_s30 = scalar_lea.vmem %s123_s28, 256 }
  0xf3   :  { %p202_p10 = scmp.ne.s32.totalorder %s123_s28, %s201_s29  ;;  %p206_p11 = scmp.lt.s32.totalorder %s123_s28, %s123_s28 }
  0xf4   :  { %p207_p12 = scmp.lt.s32.totalorder %s205_s30, %s201_s29 }
  0xf6   :  { %p208_p13 = por %p207_p12, %p206_p11 }
  0xf8   :  { %p209_p0 = pnand %p208_p13, %p202_p10 }
  0xfa   :  { %212 = shalt.err (!%p209_p0)
}
  0xfb   :  { %128 = dma.vmem_to_hbm [thread:$0]  %s123_s28, 32, %s277_s3, [#allocation4], %s228_s16, %s228_s16, %s229_s17  }
  0xfc   :  { %225 = dma.done.wait [#allocation4], 256  }
  0xfd   :  { %226 = vsyncadd [#allocation4], 4294967040 }
  0xfe   :  { %132 = vsyncpa [#allocation3], 1 }
  0xff   :  { %133 = vsyncpa [#allocation6], 1 }
 0x100   :  { %134 = vsyncpa [#allocation4], 1 }

</bundles_post_ra>
